<compile_context>
chip_gen: v7x
topology: tpu7x:2x2x1
jax: 0.10.0
libtpu: 0.0.40
codegen_flags: <defaults>
</compile_context>

<pallas_src>
import jax
import jax.numpy as jnp
from jax.experimental import pallas as pl
from jax.experimental.pallas import tpu as pltpu


def _round_up(a, b):
    return -(-a // b) * b


def _make_kernel(*, T, tT, tJ, halo_rows, n_taps, body_rows, partial_last):
    """Builds the kernel body; every tile parameter is static (closed over)."""

    def kernel(x_ref, xh_ref, w_ref, o_ref):
        i = pl.program_id(1)                       # time-tile index (inner axis)

        w = w_ref[...].astype(jnp.float32)         # (context, tJ), read once

        # Halo = first rows of the next time tile.  Mask by *global* time index
        # (cheap: halo_rows x tJ only).  Implements the trailing zero-padding
        # and neutralizes the clamped / partial halo near the sequence end.
        xh = xh_ref[...].astype(jnp.float32)
        if n_taps > 1:
            hrow = jax.lax.broadcasted_iota(jnp.int32, (halo_rows, tJ), 0)
            xh = jnp.where(hrow + (i + 1) * tT < T, xh, 0.0)

        def conv_write(load_x):
            # Body rows [0, body_rows): every tap stays inside the current x
            # tile, so read shifted windows directly (no concat, no copy).
            if body_rows > 0:
                acc = load_x(0, body_rows) * w[0:1, :]
                for c in range(1, n_taps):
                    acc = acc + load_x(c, body_rows) * w[c:c + 1, :]
                o_ref[0:body_rows, :] = acc.astype(o_ref.dtype)
            # Tail rows [body_rows, tT): taps spill into the halo; the concat
            # here is tiny (tail + context-1 rows), not a full tile.
            tail_rows = tT - body_rows
            if tail_rows > 0:
                xt = load_x(body_rows, tail_rows)
                if n_taps > 1:
                    ext = jnp.concatenate([xt, xh[0:n_taps - 1, :]], axis=0)
                else:
                    ext = xt
                acc_t = ext[0:tail_rows, :] * w[0:1, :]
                for c in range(1, n_taps):
                    acc_t = acc_t + ext[c:c + tail_rows, :] * w[c:c + 1, :]
                o_ref[body_rows:tT, :] = acc_t.astype(o_ref.dtype)

        def load_from_ref(start, length):
            return x_ref[start:start + length, :].astype(jnp.float32)

        if not partial_last:
            # Interior tiles and a full last tile: no main-tile masking at all.
            conv_write(load_from_ref)
        else:
            is_last = i == pl.num_programs(1) - 1

            @pl.when(jnp.logical_not(is_last))
            def _interior():
                conv_write(load_from_ref)

            @pl.when(is_last)
            def _boundary():
                # Only the single partial last tile pays for the full-tile
                # mask (undefined rows of the partial block + zero padding).
                xm = x_ref[...].astype(jnp.float32)
                row = jax.lax.broadcasted_iota(jnp.int32, (tT, tJ), 0)
                xm = jnp.where(row < T - i * tT, xm, 0.0)
                conv_write(lambda s, l: xm[s:s + l, :])

    return kernel


def lookahead(x, weight, context, *, time_tile=1024, lane_tile=512,
              vmem_buffer_bytes=2 << 20):
    """Lookahead convolution.

    x:      (T, N, H)       activations (seq, batch, features)
    weight: (H, 1, context) depthwise nn.Conv1d weight (groups=H, no bias)
    """
    assert context > 0
    T, N, H = x.shape
    assert weight.shape == (H, 1, context)
    NJ = N * H
    itemsize = jnp.dtype(x.dtype).itemsize
    sub = max(8, 32 // max(itemsize, 1))   # dtype-aware sublanes: f32 8, bf16 16, int8 32

    # ---- layout: fold batch into the lane axis (free reshape) ----------------
    xf = x.reshape(T, NJ)
    w = jnp.transpose(weight[:, 0, :], (1, 0))     # (C, H)
    wf = jnp.tile(w, (1, N))                       # (C, N*H): column j <-> feature j % H

    # ---- lane (batch*feature) tile --------------------------------------------
    if NJ % 128 == 0:
        tJ = max((min(lane_tile, NJ) // 128) * 128, 128)
    else:
        # Ragged lane count: full-extent lane block; the time tile is capped by
        # the VMEM budget below so the working set stays bounded.
        tJ = NJ
    nJ = pl.cdiv(NJ, tJ)

    # ---- time tile + halo ------------------------------------------------------
    halo_rows = _round_up(max(context - 1, 1), sub)
    # ~2 MiB per buffer => ~8 MiB double-buffered: inside v5e's 16 MiB scoped
    # default and v6e/v7x's 32 MiB, while large enough to amortize per-step cost.
    cap = max(vmem_buffer_bytes // (tJ * itemsize), halo_rows)
    tT = min(time_tile, cap)
    tT = max((tT // halo_rows) * halo_rows, halo_rows)
    if tT >= T:
        tT, nT = T, 1
    else:
        nT = pl.cdiv(T, tT)

    # Give the v7x megacore (2 TCs) at least two parallel steps on small inputs.
    if nT == 1 and nJ == 1 and T >= 4 * halo_rows:
        tT = _round_up(pl.cdiv(T, 2), halo_rows)
        nT = pl.cdiv(T, tT)

    n_taps = min(context, T)                 # taps reaching past T contribute zero
    partial_last = (T % tT) != 0
    # Body rows only ever read the current tile; keep the body/tail split aligned.
    body_rows = max(((tT - (n_taps - 1)) // sub) * sub, 0)

    if nT > 1:
        assert tT % halo_rows == 0, (tT, halo_rows)   # halo index map exactness
        hbpt = tT // halo_rows                        # halo blocks per time tile

        def halo_index_map(j, i):
            return (jnp.minimum(i + 1, nT - 1) * hbpt, j)
    else:
        def halo_index_map(j, i):
            return (0, j)

    kernel = _make_kernel(T=T, tT=tT, tJ=tJ, halo_rows=halo_rows,
                          n_taps=n_taps, body_rows=body_rows,
                          partial_last=partial_last)

    # Grid: lane tiles outer, time tiles inner -> weight block index (0, j) is
    # constant across the inner loop, so it is not re-fetched every step.
    yf = pl.pallas_call(
        kernel,
        out_shape=jax.ShapeDtypeStruct((T, NJ), x.dtype),
        grid_spec=pltpu.PrefetchScalarGridSpec(
            num_scalar_prefetch=0,
            grid=(nJ, nT),
            in_specs=[
                pl.BlockSpec((tT, tJ), lambda j, i: (i, j)),        # main time tile
                pl.BlockSpec((halo_rows, tJ), halo_index_map),      # halo (next tile head)
                pl.BlockSpec((context, tJ), lambda j, i: (0, j)),   # weights
            ],
            out_specs=pl.BlockSpec((tT, tJ), lambda j, i: (i, j)),
        ),
        compiler_params=pltpu.CompilerParams(
            dimension_semantics=("parallel", "parallel"),
        ),
    )(xf, xf, wf)

    return yf.reshape(T, N, H)


def lookahead_reference(x, weight, context):
    """Pure-JAX reference matching the PyTorch module."""
    T, N, H = x.shape
    x_pad = jnp.pad(x, ((0, context - 1), (0, 0), (0, 0)))
    w = weight[:, 0, :]  # (H, C)
    out = jnp.zeros((T, N, H), jnp.float32)
    for c in range(context):
        out = out + x_pad[c:c + T].astype(jnp.float32) * w[:, c][None, None, :]
    return out.astype(x.dtype)


if __name__ == "__main__":
    key = jax.random.PRNGKey(0)

    def make_case(k, T, N, H, context):
        kx, kw = jax.random.split(k)
        x = jax.random.normal(kx, (T, N, H), dtype=jnp.float32)
        bound = 1.0 / (context ** 0.5)   # nn.Conv1d default init range
        weight = jax.random.uniform(kw, (H, 1, context), dtype=jnp.float32,
                                    minval=-bound, maxval=bound)
        return x, weight

    k1, k2, k3 = jax.random.split(key, 3)

    # Case 1: seq=80, batch=2, features=256, context=3 (default tiles; the
    # megacore heuristic splits time into two full tiles).
    x1, w1 = make_case(k1, 80, 2, 256, 3)
    y1 = jax.block_until_ready(lookahead(x1, w1, 3))
    assert y1.shape == (80, 2, 256)
    assert jnp.allclose(y1, lookahead_reference(x1, w1, 3), atol=1e-5, rtol=1e-5), \
        "mismatch (default tiles)"

    # Case 2: same data, small tiles -> multiple time/lane tiles, partial last
    # time tile (exercises the pl.when boundary-masking path).
    y2 = jax.block_until_ready(lookahead(x1, w1, 3, time_tile=32, lane_tile=256))
    assert jnp.allclose(y2, lookahead_reference(x1, w1, 3), atol=1e-5, rtol=1e-5), \
        "mismatch (tiled path)"

    # Case 3: ragged lane count (N*H not a multiple of 128), T not a multiple of
    # the tile, larger context (exercises the full-extent lane fallback).
    x3, w3 = make_case(k3, 45, 3, 160, 5)
    y3 = jax.block_until_ready(lookahead(x3, w3, 5))
    assert jnp.allclose(y3, lookahead_reference(x3, w3, 5), atol=1e-5, rtol=1e-5), \
        "mismatch (ragged lanes)"

    print("KERNEL_OK")
</pallas_src>

<mosaic_0001>
module attributes {stable_mosaic.version = 11 : i64} {
  func.func @kernel(%arg0: i32, %arg1: i32, %arg2: memref<40x512xf32, #tpu.memory_space<vmem>>, %arg3: memref<8x512xf32, #tpu.memory_space<vmem>>, %arg4: memref<3x512xf32, #tpu.memory_space<vmem>>, %arg5: memref<40x512xf32, #tpu.memory_space<vmem>>) attributes {dimension_semantics = [#tpu.dimension_semantics<parallel>, #tpu.dimension_semantics<parallel>], iteration_bounds = array<i64: 1, 2>, scalar_prefetch = 0 : i64, scratch_operands = 0 : i64, tpu.core_type = #tpu.core_type<tc>, window_params = [{transform_indices = @transform_0, window_bounds = array<i64: 40, 512>}, {transform_indices = @transform_1, window_bounds = array<i64: 8, 512>}, {transform_indices = @transform_2, window_bounds = array<i64: 3, 512>}, {transform_indices = @transform_3, window_bounds = array<i64: 40, 512>}]} {
    %c0 = arith.constant 0 : index
    %c0_0 = arith.constant 0 : index
    %0 = vector.load %arg4[%c0, %c0_0] : memref<3x512xf32, #tpu.memory_space<vmem>>, vector<3x512xf32>
    %c0_1 = arith.constant 0 : index
    %c0_2 = arith.constant 0 : index
    %1 = vector.load %arg3[%c0_1, %c0_2] : memref<8x512xf32, #tpu.memory_space<vmem>>, vector<8x512xf32>
    %2 = tpu.iota {dimensions = array<i32: 0>} : vector<8x512xi32>
    %c1_i32 = arith.constant 1 : i32
    %3 = arith.addi %arg1, %c1_i32 : i32
    %c40_i32 = arith.constant 40 : i32
    %4 = arith.muli %3, %c40_i32 : i32
    %5 = vector.broadcast %4 : i32 to vector<8x512xi32>
    %6 = arith.addi %2, %5 : vector<8x512xi32>
    %c80_i32 = arith.constant 80 : i32
    %7 = vector.broadcast %c80_i32 : i32 to vector<8x512xi32>
    %8 = arith.cmpi slt, %6, %7 : vector<8x512xi32>
    %cst = arith.constant 0.000000e+00 : f32
    %9 = vector.broadcast %cst : f32 to vector<8x512xf32>
    %10 = arith.select %8, %1, %9 : vector<8x512xi1>, vector<8x512xf32>
    %c0_3 = arith.constant 0 : index
    %c0_4 = arith.constant 0 : index
    %11 = vector.load %arg2[%c0_3, %c0_4] : memref<40x512xf32, #tpu.memory_space<vmem>>, vector<32x512xf32>
    %12 = vector.extract_strided_slice %0 {offsets = [0, 0], sizes = [1, 512], strides = [1, 1]} : vector<3x512xf32> to vector<1x512xf32>
    %13 = vector.broadcast %12 : vector<1x512xf32> to vector<32x512xf32>
    %14 = arith.mulf %11, %13 : vector<32x512xf32>
    %c1 = arith.constant 1 : index
    %c0_5 = arith.constant 0 : index
    %15 = vector.load %arg2[%c1, %c0_5] : memref<40x512xf32, #tpu.memory_space<vmem>>, vector<32x512xf32>
    %16 = vector.extract_strided_slice %0 {offsets = [1, 0], sizes = [1, 512], strides = [1, 1]} : vector<3x512xf32> to vector<1x512xf32>
    %17 = vector.broadcast %16 : vector<1x512xf32> to vector<32x512xf32>
    %18 = arith.mulf %15, %17 : vector<32x512xf32>
    %19 = arith.addf %14, %18 : vector<32x512xf32>
    %c2 = arith.constant 2 : index
    %c0_6 = arith.constant 0 : index
    %20 = vector.load %arg2[%c2, %c0_6] : memref<40x512xf32, #tpu.memory_space<vmem>>, vector<32x512xf32>
    %21 = vector.extract_strided_slice %0 {offsets = [2, 0], sizes = [1, 512], strides = [1, 1]} : vector<3x512xf32> to vector<1x512xf32>
    %22 = vector.broadcast %21 : vector<1x512xf32> to vector<32x512xf32>
    %23 = arith.mulf %20, %22 : vector<32x512xf32>
    %24 = arith.addf %19, %23 : vector<32x512xf32>
    %c0_7 = arith.constant 0 : index
    %c0_8 = arith.constant 0 : index
    %25 = vector.load %arg5[%c0_7, %c0_8] : memref<40x512xf32, #tpu.memory_space<vmem>>, vector<32x512xf32>
    tpu.vector_store %arg5[%c0_7, %c0_8], %24 {strides = array<i32>} : memref<40x512xf32, #tpu.memory_space<vmem>>, vector<32x512xf32>,
    %c32 = arith.constant 32 : index
    %c0_9 = arith.constant 0 : index
    %26 = vector.load %arg2[%c32, %c0_9] : memref<40x512xf32, #tpu.memory_space<vmem>>, vector<8x512xf32>
    %27 = vector.extract_strided_slice %10 {offsets = [0, 0], sizes = [2, 512], strides = [1, 1]} : vector<8x512xf32> to vector<2x512xf32>
    %28 = tpu.concatenate %26, %27 in 0 : vector<8x512xf32>, vector<2x512xf32> -> vector<10x512xf32>
    %29 = vector.extract_strided_slice %28 {offsets = [0, 0], sizes = [8, 512], strides = [1, 1]} : vector<10x512xf32> to vector<8x512xf32>
    %30 = vector.extract_strided_slice %0 {offsets = [0, 0], sizes = [1, 512], strides = [1, 1]} : vector<3x512xf32> to vector<1x512xf32>
    %31 = vector.broadcast %30 : vector<1x512xf32> to vector<8x512xf32>
    %32 = arith.mulf %29, %31 : vector<8x512xf32>
    %33 = vector.extract_strided_slice %28 {offsets = [1, 0], sizes = [8, 512], strides = [1, 1]} : vector<10x512xf32> to vector<8x512xf32>
    %34 = vector.extract_strided_slice %0 {offsets = [1, 0], sizes = [1, 512], strides = [1, 1]} : vector<3x512xf32> to vector<1x512xf32>
    %35 = vector.broadcast %34 : vector<1x512xf32> to vector<8x512xf32>
    %36 = arith.mulf %33, %35 : vector<8x512xf32>
    %37 = arith.addf %32, %36 : vector<8x512xf32>
    %38 = vector.extract_strided_slice %28 {offsets = [2, 0], sizes = [8, 512], strides = [1, 1]} : vector<10x512xf32> to vector<8x512xf32>
    %39 = vector.extract_strided_slice %0 {offsets = [2, 0], sizes = [1, 512], strides = [1, 1]} : vector<3x512xf32> to vector<1x512xf32>
    %40 = vector.broadcast %39 : vector<1x512xf32> to vector<8x512xf32>
    %41 = arith.mulf %38, %40 : vector<8x512xf32>
    %42 = arith.addf %37, %41 : vector<8x512xf32>
    %c32_10 = arith.constant 32 : index
    %c0_11 = arith.constant 0 : index
    %43 = vector.load %arg5[%c32_10, %c0_11] : memref<40x512xf32, #tpu.memory_space<vmem>>, vector<8x512xf32>
    tpu.vector_store %arg5[%c32_10, %c0_11], %42 {strides = array<i32>} : memref<40x512xf32, #tpu.memory_space<vmem>>, vector<8x512xf32>,
    return
  }
  func.func @transform_0(%arg0: i32, %arg1: i32) -> (i32, i32) {
    %c0_i32 = arith.constant 0 : i32
    return %arg1, %arg0 : i32, i32
  }
  func.func @transform_1(%arg0: i32, %arg1: i32) -> (i32, i32) {
    %c1_i32 = arith.constant 1 : i32
    %0 = arith.addi %arg1, %c1_i32 : i32
    %c1_i32_0 = arith.constant 1 : i32
    %1 = arith.minsi %0, %c1_i32_0 : i32
    %c5_i32 = arith.constant 5 : i32
    %2 = arith.muli %1, %c5_i32 : i32
    %c0_i32 = arith.constant 0 : i32
    return %2, %arg0 : i32, i32
  }
  func.func @transform_2(%arg0: i32, %arg1: i32) -> (i32, i32) {
    %c0_i32 = arith.constant 0 : i32
    %c0_i32_0 = arith.constant 0 : i32
    return %c0_i32, %arg0 : i32, i32
  }
  func.func @transform_3(%arg0: i32, %arg1: i32) -> (i32, i32) {
    %c0_i32 = arith.constant 0 : i32
    return %arg1, %arg0 : i32, i32
  }
}

</mosaic_0001>

<bundles_post_ra>
// kernel: tpu_custom_call.1
= control target key start
LH: loop header
LB: loop body
LE: loop exit
PB: predicated region body
PF: predicated region fallthrough
CT: control target
= control target key end

     0   :  { %s1968_s0 = inlined_call_operand.hbm [shape: f32[80,512], index: 0, kind: input, shape index: {}]   ;;  %s1969_s1 = inlined_call_operand.hbm [shape: f32[80,512], index: 1, kind: input, shape index: {}]   ;;  %s1970_s2 = inlined_call_operand.hbm [shape: f32[3,512], index: 2, kind: input, shape index: {}]   ;;  %s1971_s3 = inlined_call_operand.hbm [shape: f32[80,512], index: 3, kind: output, shape index: {}]  }
   0x1   :  { %1978 = sst [smem:[#allocation13_spill]] %s1968_s0 }
   0x2   :  { %8 = vsyncpa [#allocation3], 0 }
   0x3   :  { %10 = vsyncpa [#allocation3 + $0x1], 0 }
   0x4   :  { %11 = vsyncpa [#allocation6], 0 }
   0x5   :  { %13 = vsyncpa [#allocation6 + $0x1], 0 }
   0x6   :  { %14 = vsyncpa [#allocation4], 0 }
   0x7   :  { %16 = vsyncpa [#allocation4 + $0x1], 0  ;;  %s1302_s12 = smov 0   ;;  %s1304_s13 = smov 0  }
   0x8   :  { %s1306_s14 = smov 0   ;;  %s1308_s15 = smov 0  }
   0x9   :  { %s1310_s16 = smov 0   ;;  %s1312_s17 = smov 0  }
   0xa   :  { %s1314_s18 = smov 0   ;;  %s1316_s19 = smov 0  }
   0xb LB: > { %s1341_s20 = sadd.s32 4294967295, %s1272_s19   ;;  %s939_s21 = sadd.s32 4294967294, %s1272_s19   ;;  %s1272_s19 = sphi %s1316_s19, %s22_s19   ;;  %s1268_s18 = sphi %s1314_s18, %s2006_s18   ;;  %s1264_s17 = sphi %s1312_s17, %s2005_s17   ;;  %s1260_s16 = sphi %s1310_s16, %s2004_s16   ;;  %s1256_s15 = sphi %s1308_s15, %s2003_s15   ;;  %s1252_s14 = sphi %s1306_s14, %s2002_s14   ;;  %s1248_s13 = sphi %s1304_s13, %s1949_s13   ;;  %s1244_s12 = sphi %s1302_s12, %s2001_s12  }
   0xc   : > { %s43_s22 = sadd.s32 1, %s1260_s16  ;;  %p50_p0 = scmp.ne.s32.totalorder %s1260_s16, %s1256_s15 }
   0xd   : > { %p1972_p1 = scmp.eq.s32.totalorder %s1272_s19, 0  ;;  %p56_p2 = scmp.ne.s32.totalorder %s1256_s15, %s1252_s14 }
   0xe   : > { %p1974_p3 = scmp.eq.s32.totalorder %s1341_s20, 0  ;;  %p92_p4 = scmp.ne.s32.totalorder %s1248_s13, %s1244_s12 }
   0xf   : > { %p1354_p5 = por %p1972_p1, %p50_p0  ;;  %p144_p6 = scmp.eq.s32.totalorder %s1341_s20, 1 }
  0x10   : > { %p1361_p7 = por %p1974_p3, %p56_p2  ;;  %p1367_p8 = por %p92_p4, %p1974_p3 }
  0x11   : > { %s1979_s23 = scalar_select %p1354_p5, 1, 0 }
  0x12   : > { %s1980_s24 = scalar_select %p1361_p7, 1, 0 }
  0x13   : > { %s1981_s25 = scalar_select %p1367_p8, 1, 0 }
  0x14   : > { %p1371_p9 = por %p144_p6, %p50_p0  ;;  %p150_p10 = scmp.eq.s32.totalorder %s939_s21, 1 }
  0x15   : > { %p940_p11 = scmp.ge.s32.totalorder %s1272_s19, 1  ;;  %p157_p12 = scmp.lt.s32.totalorder %s1272_s19, 3 }
  0x16   : > { %s1982_s26 = scalar_select %p1371_p9, 1, 0 }
  0x17   : > { %p1377_p13 = por %p150_p10, %p56_p2  ;;  %p1381_p1 = pnand %p940_p11, %p157_p12 }
  0x18   : > { %s1274_s29 = smov [#allocation7]   ;;  %s184_s5 = sand.u32 1, %s1260_s16  }
  0x19   : > { %s1983_s27 = scalar_select %p1377_p13, 1, 0 }
  0x1a   : > { %s1984_s28 = scalar_select %p1381_p1, 1, 0 }
  0x1b   : > { %s173_s30 = sshll.u32 %s1274_s29, 4  ;;  %p976_p0 = pneg %p1381_p1  ;;  %s174_s30 = int_to_ptr.vmem [resolvable:$true] %s173_s30 }
  0x1c   : > { %s961_s6 = smul.u32 2560, %s1268_s18  ;;  %s1072_s9 = scalar_lea.hbm %s1970_s2, 256 }
  0x1d   : > { %p1391_p9 = pnand %p976_p0, %p1974_p3  ;;  %p1073_p2 = scmp.ne.s32.totalorder %s1970_s2, %s1072_s9 }
  0x1e   : > { %p1079_p0 = scmp.lt.u32.totalorder %s1072_s9, %s1970_s2 }
  0x1f   : > { %p1074_p10 = pneg %p1391_p9 }
  0x21   : > { %p1075_p11 = pnand %p1074_p10, %p1073_p2 }
  0x23   : > { %p1076_p12 = pneg %p1075_p11 }
  0x25   : > { %p1081_p4 = pnand %p1079_p0, %p1076_p12 }
  0x27   : > { %1084 = shalt.err (!%p1081_p4)
}
  0x28   : > { %s1085_s29 = scalar_lea.vmem %s174_s30, 256  ;;  %p1093_p8 = scmp.lt.s32.totalorder %s174_s30, %s174_s30 }
  0x29   : > { %p1086_p3 = scmp.ne.s32.totalorder %s174_s30, %s1085_s29  ;;  %p1094_p7 = scmp.lt.s32.totalorder %s1085_s29, %s1085_s29 }
  0x2b   : > { %p1088_p6 = pnand %p1086_p3, %p1074_p10  ;;  %p1095_p1 = por %p1094_p7, %p1093_p8 }
  0x2d   : > { %p1089_p13 = pneg %p1088_p6 }
  0x2f   : > { %p1096_p5 = pnand %p1095_p1, %p1089_p13 }
  0x31   : > { %1099 = shalt.err (!%p1096_p5)
}
  0x32   : > { %979 = dma.hbm_to_vmem [thread:$0]  (!%p1391_p9), %s1970_s2, 256, %s174_s30, [#allocation6]  }
  0x33   : > { %s964_s9 = smul.u32 160, %s184_s5  ;;  %s1986_s0 = sld [smem:[#allocation13_spill]] }
  0x34   : > { %p1987_p3 = scmp.ne.s32.totalorder %s1979_s23, 0  ;;  %p1988_p4 = scmp.lt.s32.totalorder %s1272_s19, 2 }
  0x35   : > { %s188_s21 = scalar_lea.vmem [#allocation2], %s964_s9  ;;  %s1428_s29 = scalar_lea.sflag [#allocation3], %s184_s5 }
  0x36   : > { %p1422_p1 = pnand %p1988_p4, %p1987_p3  ;;  %s198_s30 = sshll.u32 %s188_s21, 4  ;;  %s1426_s30 = int_to_ptr.vmem [resolvable:$true] %s198_s30 }
  0x38   : > { %p1102_p7 = pneg %p1422_p1 }
  0x39   : > { %s1416_s12 = scalar_lea.hbm %s1986_s0, %s961_s6  ;;  %s1105_s8 = scalar_lea.hbm %s1986_s0, 5120 }
  0x3a   : > { %s1100_s6 = scalar_lea.hbm %s1416_s12, 2560  ;;  %p1106_p13 = scmp.lt.u32.totalorder %s1416_s12, %s1986_s0 }
  0x3b   : > { %p1101_p5 = scmp.ne.s32.totalorder %s1416_s12, %s1100_s6  ;;  %p1107_p6 = scmp.lt.u32.totalorder %s1105_s8, %s1100_s6 }
  0x3c   : > { %p1109_p10 = scmp.lt.u32.totalorder %s1100_s6, %s1416_s12 }
  0x3d   : > { %p1103_p8 = pnand %p1102_p7, %p1101_p5  ;;  %p1108_p2 = por %p1107_p6, %p1106_p13 }
  0x3f   : > { %p1104_p9 = pneg %p1103_p8  ;;  %p1110_p11 = por %p1109_p10, %p1108_p2 }
  0x41   : > { %p1111_p12 = pnand %p1110_p11, %p1104_p9 }
  0x43   : > { %1114 = shalt.err (!%p1111_p12)
}
  0x44   : > { %s1115_s5 = scalar_lea.vmem %s1426_s30, 2560  ;;  %s1275_s9 = smov [#allocation2]  }
  0x45   : > { %p1116_p0 = scmp.ne.s32.totalorder %s1426_s30, %s1115_s5  ;;  %s1120_s21 = sshll.u32 %s1275_s9, 4  ;;  %s1121_s21 = int_to_ptr.vmem [resolvable:$false] %s1120_s21 }
  0x46   : > { %s1122_s23 = scalar_lea.vmem %s1121_s21, 5120  ;;  %p1123_p5 = scmp.lt.s32.totalorder %s1426_s30, %s1121_s21 }
  0x47   : > { %p1118_p3 = pnand %p1116_p0, %p1102_p7  ;;  %p1124_p8 = scmp.lt.s32.totalorder %s1122_s23, %s1115_s5 }
  0x49   : > { %p1119_p4 = pneg %p1118_p3  ;;  %p1125_p13 = por %p1124_p8, %p1123_p5 }
  0x4b   : > { %p1126_p6 = pnand %p1125_p13, %p1119_p4 }
  0x4d   : > { %1129 = shalt.err (!%p1126_p6)
}
  0x4e   : > { %s1276_s6 = smov 512   ;;  %s1277_s7 = smov 32  }
  0x4f   : > { %983 = dma.hbm_to_vmem [thread:$0]  (!%p1422_p1), %s1416_s12, 2560, %s1426_s30, %s1428_s29, %s1276_s6, %s1276_s6, %s1277_s7  }
  0x50   : > { %s31_s8 = sadd.s32 1, %s1268_s18  ;;  %p1241_p9 = scmp.ne.s32.totalorder %s1248_s13, 0 }
  0x51   : > { %p32_p7 = scmp.ge.s32.totalorder %s31_s8, 2  ;;  %p1990_p10 = scmp.eq.s32.totalorder %s1272_s19, 0 }
  0x52   : > { %s208_s5 = sand.u32 1, %s1272_s19   ;;  %s1473_s23 = scalar_lea.hbm %s1969_s1, 2560 }
  0x53   : > { %s2008_s8 = smov (%p32_p7, %s31_s8), 0  ;;  %p88_p11 = por %p1241_p9, %p1990_p10 }
  0x54   : > { %s38_s10 = ssub.s32 %s1268_s18, %s2008_s8  ;;  %s1278_s12 = smov [#allocation5]  }
  0x55   : > { %p41_p2 = scmp.eq.s32.totalorder %s38_s10, 0  ;;  %s226_s4 = sshll.u32 %s1278_s12, 4  ;;  %s227_s4 = int_to_ptr.vmem [resolvable:$true] %s226_s4 }
  0x56   : > { %p1991_p1 = scmp.lt.s32.totalorder %s1272_s19, 2  ;;  %s1240_s7 = scalar_lea.hbm %s1969_s1, 3072 }
  0x57   : > { %s1467_s11 = scalar_select %p41_p2, %s1260_s16, %s43_s22  }
  0x58   : > { %p1477_p12 = pnand %p1991_p1, %p88_p11  ;;  %s209_s22 = scalar_lea.sflag [#allocation6], %s208_s5 }
  0x59   : > { %p1131_p0 = scmp.ne.s32.totalorder %s1473_s23, %s1240_s7  ;;  %s1135_s21 = scalar_lea.hbm %s1969_s1, 5120 }
  0x5a   : > { %p1132_p3 = pneg %p1477_p12  ;;  %p1136_p8 = scmp.lt.u32.totalorder %s1473_s23, %s1969_s1 }
  0x5b   : > { %p1137_p13 = scmp.lt.u32.totalorder %s1135_s21, %s1240_s7  ;;  %p1139_p7 = scmp.lt.u32.totalorder %s1240_s7, %s1473_s23 }
  0x5c   : > { %p1133_p4 = pnand %p1132_p3, %p1131_p0 }
  0x5d   : > { %p1138_p6 = por %p1137_p13, %p1136_p8 }
  0x5e   : > { %p1134_p5 = pneg %p1133_p4 }
  0x5f   : > { %p1140_p9 = por %p1139_p7, %p1138_p6 }
  0x61   : > { %p1141_p2 = pnand %p1140_p9, %p1134_p5 }
  0x63   : > { %1144 = shalt.err (!%p1141_p2)
}
  0x64   : > { %s1145_s5 = scalar_lea.vmem %s227_s4, 512  ;;  %s1152_s29 = scalar_lea.vmem %s227_s4, 1024 }
  0x65   : > { %p1146_p10 = scmp.ne.s32.totalorder %s227_s4, %s1145_s5  ;;  %p1153_p0 = scmp.lt.s32.totalorder %s227_s4, %s227_s4 }
  0x66   : > { %p1154_p4 = scmp.lt.s32.totalorder %s1152_s29, %s1145_s5 }
  0x67   : > { %p1148_p11 = pnand %p1146_p10, %p1132_p3 }
  0x68   : > { %p1155_p8 = por %p1154_p4, %p1153_p0 }
  0x69   : > { %p1149_p1 = pneg %p1148_p11 }
  0x6b   : > { %p1156_p13 = pnand %p1155_p8, %p1149_p1 }
  0x6d   : > { %1159 = shalt.err (!%p1156_p13)
}
  0x6e   : > { %986 = dma.hbm_to_vmem [thread:$0]  (!%p1477_p12), %s1473_s23, 512, %s227_s4, %s209_s22  }
  0x6f   : > { %p1993_p5 = scmp.ne.s32.totalorder %s1984_s28, 0 }
  0x70   : > { %s1507_s0 = sand.u32 (!%p1993_p5), 1, %s1256_s15   ;;  %p1994_p3 = scmp.ne.s32.totalorder (!%p1993_p5), %s1980_s24, 0 }
  0x71   : > { %235 = sbr.rel (%p1993_p5) target bundleno = 215 (0xd7), region = 32  ;;  %s238_s7 = scalar_lea.sflag (!%p1993_p5), [#allocation3], %s1507_s0 }
  0x72   : > { %s965_s6 = smul.u32 (!%p1993_p5), 160, %s1507_s0 }
  0x74   : > { %s1513_s10 = scalar_lea.vmem (!%p1993_p5), [#allocation2], %s965_s6 }
  0x78   : > { %1225 = dma.done.wait (%p1994_p3), %s238_s7, 2560  }
  0x79   : > { %1227 = vsyncadd (%p1994_p3), %s238_s7, 4294964736  ;;  %s246_s28 = sand.u32 1, %s1341_s20   ;;  %s248_s23 = sand.u32 1, %s1248_s13  }
  0x7a   : > { %s949_s4 = sshll.u32 %s248_s23, 5  ;;  %s247_s30 = scalar_lea.sflag [#allocation6], %s246_s28 }
  0x7b   : > { %s1521_s22 = scalar_lea.vmem [#allocation5], %s949_s4  ;;  %p1995_p12 = scmp.ne.s32.totalorder %s1981_s25, 0 }
  0x7d   : > { %1229 = dma.done.wait (%p1995_p12), %s247_s30, 512  }
  0x7e   : > { %1231 = vsyncadd (%p1995_p12), %s247_s30, 4294966784  ;;  %p1996_p6 = scmp.eq.s32.totalorder %s1341_s20, 0 }
  0x80   : > { %1233 = dma.done.wait (%p1996_p6), [#allocation6], 256   ;;  %p1997_p7 = pmov %p1996_p6 }
  0x81   : > { %v298_v0 = vlaneseq  ;;  %s300_s24 = sadd.s32 1, %s1264_s17  ;;  %v292_v9 = vld [vmem:[#allocation7] sm:$0x77]  ;;  %vm475_vm0 = vcmask 1046528   ;;  %vm628_vm1 = vcmask 1045504   ;;  %v310_v18 = vld [vmem:[%s1513_s10 + $0x8] sm:$0xff] }
  0x82   : > { %1235 = vsyncadd (%p1997_p7), [#allocation6], 4294967040  ;;  %s301_s9 = smul.u32 40, %s300_s24  ;;  %v309_v10 = vld [vmem:[%s1513_s10] sm:$0xff]  ;;  %v380_v26 = vld [vmem:[%s1513_s10 + $0x8] sm:$0xfe] }
  0x83   : > { %v1532_v1 = vshrl.u32 %v298_v0, 7  ;;  %v379_v12 = vld [vmem:[%s1513_s10] sm:$0xfe]  ;;  %v1579_v27 = vld [vmem:[%s1513_s10 + $0x28] sm:$0xff]  ;;  %v311_v46 = vld [vmem:[%s1513_s10 + $0x10] sm:$0xff]  ;;  %s1658_s20 = scalar_lea.vmem [#allocation8], %s965_s6 }
  0x84   : > { %v302_v8 = vstv %s301_s9  ;;  %v1554_v16 = vld [vmem:[%s1513_s10 + $0x20] sm:$0xff]  ;;  %v293_v28 = vld [vmem:[#allocation7 + $0x8] sm:$0x77]  ;;  %v381_v51 = vld [vmem:[%s1513_s10 + $0x10] sm:$0xfe]  ;;  %s963_s25 = smul.u32 2560, %s1264_s17 }
  0x85   : > { %v1535_v2 = vsub.s32 0, %v1532_v1  ;;  %v1538_v3 = vsub.s32 1, %v1532_v1  ;;  %v1541_v4 = vsub.s32 2, %v1532_v1  ;;  %v333_v5 = vsub.s32 4, %v1532_v1  ;;  %v544_v17 = vld [vmem:[%s1513_s10] sm:$0xfc] }
  0x86   : > { %v405_v6 = vsub.s32 5, %v1532_v1  ;;  %v558_v7 = vsub.s32 6, %v1532_v1  ;;  %v1563_v21 = vadd.s32 %v302_v8, %v1532_v1  ;;  %v545_v30 = vld [vmem:[%s1513_s10 + $0x8] sm:$0xfc]  ;;  %v1618_v52 = vld [vmem:[%s1513_s10 + $0x30] sm:$0xff]  ;;  %s814_s21 = sshll.u32 %s1658_s20, 4  ;;  %s1913_s29 = scalar_lea.hbm %s1971_s3, %s963_s25  ;;  %s1908_s21 = int_to_ptr.vmem [resolvable:$true] %s814_s21 }
  0x87   : > { %v330_v11 = vrot.slane %v292_v9, %v1535_v2  ;;  %v402_v13 = vrot.slane %v292_v9, %v1538_v3  ;;  %v555_v14 = vrot.slane %v292_v9, %v1541_v4  ;;  %v334_v15 = vrot.slane %v292_v9, %v333_v5  ;;  %s798_s17 = scalar_lea.sflag [#allocation4], %s1507_s0  ;;  %s1160_s6 = scalar_lea.vmem %s1908_s21, 2560 }
  0x88   : > { %v406_v19 = vrot.slane %v292_v9, %v405_v6  ;;  %v559_v20 = vrot.slane %v292_v9, %v558_v7  ;;  %v338_v32 = vrot.slane %v293_v28, %v1535_v2  ;;  %v410_v33 = vrot.slane %v293_v28, %v1538_v3  ;;  %p1161_p9 = scmp.ne.s32.totalorder %s1908_s21, %s1160_s6  ;;  %p1998_p2 = scmp.ne.s32.totalorder %s1982_s26, 0 }
  0x89   : > { %v1566_v22 = vrot.slane %v330_v11, %v1535_v2  ;;  %v1569_v23 = vrot.slane %v402_v13, %v1538_v3  ;;  %v1572_v24 = vrot.slane %v555_v14, %v1541_v4  ;;  %v1575_v25 = vrot.slane %v334_v15, %v1535_v2  ;;  %s1279_s7 = smov [#allocation8]  }
  0x8a   : > { %v1582_v29 = vrot.slane %v406_v19, %v1538_v3  ;;  %v1586_v31 = vrot.slane %v559_v20, %v1541_v4  ;;  %v1624_v55 = vrot.slane %v338_v32, %v1535_v2  ;;  %v1627_v56 = vrot.slane %v410_v33, %v1538_v3  ;;  %p1162_p10 = pnand %p1161_p9, %p1998_p2 }
  0x8b   : > { %v363_v34 = vmul.f32 %v1566_v22, %v309_v10  ;;  %v435_v35 = vmul.f32 %v1569_v23, %v379_v12  ;;  %v1594_v36 = vmul.f32 %v1569_v23, %v1554_v16  ;;  %v588_v37 = vmul.f32 %v1572_v24, %v544_v17  ;;  %v1649_v12 = vld [vmem:[%s1513_s10 + $0x40] sm:$0xff]  ;;  %v546_v17 = vld [vmem:[%s1513_s10 + $0x10] sm:$0xfc] }
  0x8c   : > { %v1599_v38 = vmul.f32 %v1572_v24, %v1554_v16  ;;  %v364_v39 = vmul.f32 %v1575_v25, %v310_v18  ;;  %v436_v40 = vmul.f32 %v1582_v29, %v380_v26  ;;  %v1605_v41 = vmul.f32 %v1582_v29, %v1579_v27  ;;  %v312_v18 = vld [vmem:[%s1513_s10 + $0x18] sm:$0xff]  ;;  %p1163_p11 = pneg %p1162_p10 }
  0x8d   : > { %v476_v42 = vrot.slane %v435_v35, 1  ;;  %v477_v43 = vrot.slane %v1594_v36, 1  ;;  %v629_v44 = vrot.slane %v588_v37, 2  ;;  %v589_v45 = vmul.f32 %v1586_v31, %v545_v30  ;;  %v382_v26 = vld [vmem:[%s1513_s10 + $0x18] sm:$0xfe] }
  0x8e   : > { %v630_v47 = vrot.slane %v1599_v38, 2  ;;  %v479_v48 = vrot.slane %v436_v40, 1  ;;  %v480_v49 = vrot.slane %v1605_v41, 1  ;;  %v1614_v50 = vmul.f32 %v1586_v31, %v1579_v27  ;;  %v386_v30 = vld [vmem:[%s1513_s10 + $0x38] sm:$0xff] }
  0x8f   : > { %v478_v53 = vsel %vm475_vm0, %v476_v42, %v477_v43  ;;  %v632_v54 = vrot.slane %v589_v45, 2  ;;  %v365_v62 = vmul.f32 %v1624_v55, %v311_v46  ;;  %v437_v63 = vmul.f32 %v1627_v56, %v381_v51  ;;  %v547_v37 = vld [vmem:[%s1513_s10 + $0x18] sm:$0xfc] }
  0x90   : > { %v528_v57 = vadd.f32 %v478_v53, %v363_v34  ;;  %v631_v58 = vsel %vm628_vm1, %v629_v44, %v630_v47  ;;  %v481_v59 = vsel %vm475_vm0, %v479_v48, %v480_v49  ;;  %v633_v60 = vrot.slane %v1614_v50, 2  ;;  %v388_v44 = vld [vmem:[%s1513_s10 + $0x48] sm:$0xff] }
  0x91   : > { %v529_v61 = vadd.f32 %v481_v59, %v364_v39  ;;  %v1640_v0 = vmul.f32 %v1627_v56, %v1618_v52  ;;  %v563_v10 = vrot.slane %v293_v28, %v1541_v4  ;;  %v342_v11 = vrot.slane %v293_v28, %v333_v5 }
  0x92   : > { %v681_v8 = vadd.f32 %v631_v58, %v528_v57  ;;  %v634_v9 = vsel %vm628_vm1, %v632_v54, %v633_v60  ;;  %v482_v14 = vrot.slane %v437_v63, 1  ;;  %v414_v19 = vrot.slane %v293_v28, %v405_v6 }
  0x93   : > { %v682_v13 = vadd.f32 %v634_v9, %v529_v61  ;;  %v483_v15 = vrot.slane %v1640_v0, 1  ;;  %v1662_v5 = vrot.slane %v563_v10, %v1541_v4  ;;  %v1665_v20 = vrot.slane %v342_v11, %v1535_v2 }
  0x94   : > { %697 = vst [vmem:[%s1658_s20] sm:$0xff] %v681_v8  ;;  %v567_v32 = vrot.slane %v293_v28, %v558_v7  ;;  %v367_v6 = vmul.f32 %v1554_v16, %v1566_v22  ;;  %v1678_v34 = vrot.slane %v414_v19, %v1538_v3  ;;  %v1682_v2 = vmul.f32 %v1569_v23, %v1649_v12 }
  0x95   : > { %698 = vst [vmem:[%s1658_s20 + $0x8] sm:$0xff] %v682_v13  ;;  %v484_v33 = vsel %vm475_vm0, %v482_v14, %v483_v15  ;;  %v1686_v1 = vmul.f32 %v1572_v24, %v1649_v12  ;;  %v590_v28 = vmul.f32 %v1662_v5, %v546_v17  ;;  %v594_v16 = vmul.f32 %v1662_v5, %v1618_v52 }
  0x96   : > { %v530_v7 = vadd.f32 %v484_v33, %v365_v62  ;;  %v366_v35 = vmul.f32 %v1665_v20, %v312_v18  ;;  %v438_v3 = vmul.f32 %v1678_v34, %v382_v26  ;;  %v1695_v39 = vmul.f32 %v1678_v34, %v386_v30  ;;  %v389_v62 = vld [vmem:[%s1513_s10 + $0x50] sm:$0xff]  ;;  %v390_v18 = vld [vmem:[%s1513_s10 + $0x58] sm:$0xff]  ;;  %v391_v33 = vld [vmem:[%s1513_s10 + $0x60] sm:$0xff] }
  0x97   : > { %v1698_v40 = vrot.slane %v567_v32, %v1541_v4  ;;  %v488_v42 = vrot.slane %v1682_v2, 1  ;;  %v635_v45 = vrot.slane %v590_v28, 2  ;;  %v636_v46 = vrot.slane %v594_v16, 2 }
  0x98   : > { %v641_v48 = vrot.slane %v1686_v1, 2  ;;  %v368_v51 = vmul.f32 %v1579_v27, %v1575_v25  ;;  %v485_v53 = vrot.slane %v438_v3, 1  ;;  %v486_v54 = vrot.slane %v1695_v39, 1  ;;  %v392_v3 = vld [vmem:[%s1513_s10 + $0x68] sm:$0xff] }
  0x99   : > { %v591_v57 = vmul.f32 %v1698_v40, %v547_v37  ;;  %v595_v58 = vmul.f32 %v1698_v40, %v386_v30  ;;  %v637_v4 = vsel %vm628_vm1, %v635_v45, %v636_v46  ;;  %v489_v59 = vsel %vm475_vm0, %v477_v43, %v488_v42 }
  0x9a   : > { %v642_v27 = vsel %vm628_vm1, %v630_v47, %v641_v48  ;;  %v1720_v61 = vmul.f32 %v1582_v29, %v388_v44  ;;  %v683_v63 = vadd.f32 %v637_v4, %v530_v7  ;;  %v487_v8 = vsel %vm475_vm0, %v485_v53, %v486_v54 }
  0x9b   : > { %v638_v9 = vrot.slane %v591_v57, 2  ;;  %v639_v10 = vrot.slane %v595_v58, 2  ;;  %v531_v36 = vadd.f32 %v487_v8, %v366_v35  ;;  %v532_v11 = vadd.f32 %v489_v59, %v367_v6  ;;  %v393_v58 = vld [vmem:[%s1513_s10 + $0x70] sm:$0xff] }
  0x9c   : > { %v490_v43 = vrot.slane %v1720_v61, 1  ;;  %v597_v13 = vmul.f32 %v1586_v31, %v388_v44  ;;  %699 = vst [vmem:[%s1658_s20 + $0x10] sm:$0xff] %v683_v63  ;;  %v369_v47 = vmul.f32 %v1618_v52, %v1624_v55  ;;  %v1731_v14 = vmul.f32 %v1627_v56, %v389_v62 }
  0x9d   : > { %v640_v38 = vsel %vm628_vm1, %v638_v9, %v639_v10  ;;  %v1734_v17 = vmul.f32 %v1662_v5, %v389_v62  ;;  %v685_v26 = vadd.f32 %v642_v27, %v532_v11  ;;  %v370_v16 = vmul.f32 %v386_v30, %v1665_v20 }
  0x9e   : > { %v684_v19 = vadd.f32 %v640_v38, %v531_v36  ;;  %v491_v32 = vsel %vm475_vm0, %v480_v49, %v490_v43  ;;  %v643_v6 = vrot.slane %v597_v13, 2  ;;  %v492_v28 = vrot.slane %v1731_v14, 1  ;;  %v394_v13 = vld [vmem:[%s1513_s10 + $0x78] sm:$0xff] }
  0x9f   : > { %v533_v7 = vadd.f32 %v491_v32, %v368_v51  ;;  %v645_v52 = vrot.slane %v1734_v17, 2  ;;  %701 = vst [vmem:[%s1658_s20 + $0x20] sm:$0xff] %v685_v26  ;;  %v1750_v41 = vmul.f32 %v1678_v34, %v390_v18  ;;  %v1753_v49 = vmul.f32 %v1698_v40, %v390_v18 }
  0xa0   : > { %700 = vst [vmem:[%s1658_s20 + $0x18] sm:$0xff] %v684_v19  ;;  %v644_v35 = vsel %vm628_vm1, %v633_v60, %v643_v6  ;;  %v371_v37 = vmul.f32 %v1649_v12, %v1566_v22  ;;  %v493_v30 = vsel %vm475_vm0, %v483_v15, %v492_v28  ;;  %v1763_v60 = vmul.f32 %v1569_v23, %v391_v33 }
  0xa1   : > { %v686_v39 = vadd.f32 %v644_v35, %v533_v7  ;;  %v646_v50 = vsel %vm628_vm1, %v636_v46, %v645_v52  ;;  %v534_v45 = vadd.f32 %v493_v30, %v369_v47  ;;  %v494_v51 = vrot.slane %v1750_v41, 1  ;;  %v395_v47 = vld [vmem:[%s1513_s10 + $0x80] sm:$0x1]  ;;  %v396_v7 = vld [vmem:[%s1513_s10 + $0x88] sm:$0x1] }
  0xa2   : > { %v647_v53 = vrot.slane %v1753_v49, 2  ;;  %v1768_v57 = vmul.f32 %v1572_v24, %v391_v33  ;;  %v496_v12 = vrot.slane %v1763_v60, 1  ;;  %v372_v0 = vmul.f32 %v388_v44, %v1575_v25  ;;  %v549_v49 = vld [vmem:[%s1513_s10 + $0x88] sm:$0x3] }
  0xa3   : > { %702 = vst [vmem:[%s1658_s20 + $0x28] sm:$0xff] %v686_v39  ;;  %v1774_v15 = vmul.f32 %v1582_v29, %v392_v3  ;;  %v1777_v46 = vmul.f32 %v1586_v31, %v392_v3  ;;  %v687_v4 = vadd.f32 %v646_v50, %v534_v45  ;;  %v495_v59 = vsel %vm475_vm0, %v486_v54, %v494_v51 }
  0xa4   : > { %v648_v27 = vsel %vm628_vm1, %v639_v10, %v647_v53  ;;  %v649_v61 = vrot.slane %v1768_v57, 2  ;;  %v535_v63 = vadd.f32 %v495_v59, %v370_v16  ;;  %v497_v44 = vsel %vm475_vm0, %v488_v42, %v496_v12  ;;  %v397_v57 = vld [vmem:[%s1513_s10 + $0x90] sm:$0x1] }
  0xa5   : > { %v498_v8 = vrot.slane %v1774_v15, 1  ;;  %v651_v9 = vrot.slane %v1777_v46, 2  ;;  %703 = vst [vmem:[%s1658_s20 + $0x30] sm:$0xff] %v687_v4  ;;  %v536_v36 = vadd.f32 %v497_v44, %v371_v37  ;;  %v373_v10 = vmul.f32 %v389_v62, %v1624_v55  ;;  %v550_v59 = vld [vmem:[%s1513_s10 + $0x90] sm:$0x3] }
  0xa6   : > { %v650_v54 = vsel %vm628_vm1, %v641_v48, %v649_v61  ;;  %v1794_v11 = vmul.f32 %v1627_v56, %v393_v58  ;;  %v688_v2 = vadd.f32 %v648_v27, %v535_v63  ;;  %v1802_v1 = vmul.f32 %v1662_v5, %v393_v58  ;;  %v548_v48 = vld [vmem:[%s1513_s10 + $0x80] sm:$0x3] }
  0xa7   : > { %v499_v42 = vsel %vm475_vm0, %v490_v43, %v498_v8  ;;  %v652_v38 = vsel %vm628_vm1, %v643_v6, %v651_v9  ;;  %vm304_vm2 = vcmp.lt.s32.totalorder %v1563_v21, 80  ;;  %v689_v62 = vadd.f32 %v650_v54, %v536_v36 }
  0xa8   : > { %v537_v14 = vadd.f32 %v499_v42, %v372_v0  ;;  %v500_v17 = vrot.slane %v1794_v11, 1  ;;  %v374_v19 = vmul.f32 %v390_v18, %v1665_v20  ;;  %704 = vst [vmem:[%s1658_s20 + $0x38] sm:$0xff] %v688_v2  ;;  %v653_v43 = vrot.slane %v1802_v1, 2  ;;  %v398_v11 = vld [vmem:[%s1513_s10 + $0x98] sm:$0x1]  ;;  %v294_v2 = vld [vmem:[%s1521_s22] sm:$0xff] }
  0xa9   : > { %v1812_v26 = vmul.f32 %v1678_v34, %v394_v13  ;;  %v1815_v32 = vmul.f32 %v1698_v40, %v394_v13  ;;  %v375_v6 = vmul.f32 %v391_v33, %v1566_v22  ;;  %705 = vst [vmem:[%s1658_s20 + $0x40] sm:$0xff] %v689_v62  ;;  %v451_v18 = vmul.f32 %v1569_v23, %v395_v47  ;;  %v713_v1 = vld [vmem:[%s1513_s10 + $0x80] sm:$0xff] }
  0xaa   : > { %v690_v16 = vadd.f32 %v652_v38, %v537_v14  ;;  %v501_v35 = vsel %vm475_vm0, %v492_v28, %v500_v17  ;;  %v604_v41 = vmul.f32 %v1572_v24, %v548_v48  ;;  %v654_v39 = vsel %vm628_vm1, %v645_v52, %v653_v43 }
  0xab   : > { %v538_v37 = vadd.f32 %v501_v35, %v373_v10  ;;  %v502_v30 = vrot.slane %v1812_v26, 1  ;;  %v655_v50 = vrot.slane %v1815_v32, 2  ;;  %v504_v33 = vrot.slane %v451_v18, 1 }
  0xac   : > { %706 = vst [vmem:[%s1658_s20 + $0x48] sm:$0xff] %v690_v16  ;;  %v657_v60 = vrot.slane %v604_v41, 2  ;;  %v376_v45 = vmul.f32 %v392_v3, %v1575_v25  ;;  %v452_v28 = vmul.f32 %v1582_v29, %v396_v7  ;;  %v605_v4 = vmul.f32 %v1586_v31, %v549_v49 }
  0xad   : > { %v691_v0 = vadd.f32 %v654_v39, %v538_v37  ;;  %v503_v15 = vsel %vm475_vm0, %v494_v51, %v502_v30  ;;  %v656_v52 = vsel %vm628_vm1, %v647_v53, %v655_v50  ;;  %v505_v63 = vsel %vm475_vm0, %v496_v12, %v504_v33  ;;  %v551_v53 = vld [vmem:[%s1513_s10 + $0x98] sm:$0x3] }
  0xae   : > { %v539_v27 = vadd.f32 %v503_v15, %v374_v19  ;;  %v658_v3 = vsel %vm628_vm1, %v649_v61, %v657_v60  ;;  %v506_v44 = vrot.slane %v452_v28, 1  ;;  %v540_v36 = vadd.f32 %v505_v63, %v375_v6  ;;  %v295_v6 = vld [vmem:[%s1521_s22 + $0x8] sm:$0xff] }
  0xaf   : > { %707 = vst [vmem:[%s1658_s20 + $0x50] sm:$0xff] %v691_v0  ;;  %v659_v54 = vrot.slane %v605_v4, 2  ;;  %v377_v10 = vmul.f32 %v393_v58, %v1624_v55  ;;  %v453_v51 = vmul.f32 %v1627_v56, %v397_v57  ;;  %v606_v12 = vmul.f32 %v1662_v5, %v550_v59 }
  0xb0   : > { %v692_v42 = vadd.f32 %v656_v52, %v539_v27  ;;  %v507_v38 = vsel %vm475_vm0, %v498_v8, %v506_v44  ;;  %v378_v61 = vmul.f32 %v394_v13, %v1665_v20  ;;  %v693_v47 = vadd.f32 %v658_v3, %v540_v36 }
  0xb1   : > { %v541_v48 = vadd.f32 %v507_v38, %v376_v45  ;;  %v660_v58 = vsel %vm628_vm1, %v651_v9, %v659_v54  ;;  %v508_v62 = vrot.slane %v453_v51, 1  ;;  %v661_v14 = vrot.slane %v606_v12, 2  ;;  %v716_v38 = vld [vmem:[%s1513_s10 + $0x98] sm:$0xff] }
  0xb2   : > { %708 = vst [vmem:[%s1658_s20 + $0x58] sm:$0xff] %v692_v42  ;;  %v454_v19 = vmul.f32 %v1678_v34, %v398_v11  ;;  %v607_v8 = vmul.f32 %v1698_v40, %v551_v53  ;;  %v305_v26 = vsel %vm304_vm2, %v294_v2, 0.0  ;;  %709 = vst [vmem:[%s1658_s20 + $0x60] sm:$0xff] %v693_v47  ;;  %v717_v46 = vmul.f32 %v713_v1, %v1566_v22  ;;  %v714_v22 = vld [vmem:[%s1513_s10 + $0x88] sm:$0xff]  ;;  %v297_v11 = vld [vmem:[%s1521_s22 + $0x18] sm:$0xff] }
  0xb3   : > { %v694_v13 = vadd.f32 %v660_v58, %v541_v48  ;;  %v509_v32 = vsel %vm475_vm0, %v500_v17, %v508_v62  ;;  %v721_v9 = vmul.f32 %v713_v1, %v1569_v23  ;;  %v662_v16 = vsel %vm628_vm1, %v653_v43, %v661_v14 }
  0xb4   : > { %v542_v7 = vadd.f32 %v509_v32, %v377_v10  ;;  %v510_v35 = vrot.slane %v454_v19, 1  ;;  %v663_v18 = vrot.slane %v607_v8, 2  ;;  %v725_v41 = vmul.f32 %v1569_v23, %v305_v26 }
  0xb5   : > { %710 = vst [vmem:[%s1658_s20 + $0x68] sm:$0xff] %v694_v13  ;;  %v737_v49 = vrot.slane %v721_v9, 1  ;;  %v757_v37 = vmul.f32 %v713_v1, %v1572_v24  ;;  %v761_v17 = vmul.f32 %v1572_v24, %v305_v26  ;;  %v306_v43 = vsel %vm304_vm2, %v295_v6, 0.0 }
  0xb6   : > { %v695_v39 = vadd.f32 %v662_v16, %v542_v7  ;;  %v511_v33 = vsel %vm475_vm0, %v502_v30, %v510_v35  ;;  %v664_v60 = vsel %vm628_vm1, %v655_v50, %v663_v18  ;;  %v738_v28 = vrot.slane %v725_v41, 1  ;;  %v296_v30 = vld [vmem:[%s1521_s22 + $0x10] sm:$0xff] }
  0xb7   : > { %v543_v45 = vadd.f32 %v511_v33, %v378_v61  ;;  %v773_v57 = vrot.slane %v757_v37, 2  ;;  %v774_v23 = vrot.slane %v761_v17, 2  ;;  %v718_v0 = vmul.f32 %v714_v22, %v1575_v25  ;;  %v715_v50 = vld [vmem:[%s1513_s10 + $0x90] sm:$0xff]  ;;  %s1164_s10 = sshll.u32 %s1279_s7, 4  ;;  %s1165_s10 = int_to_ptr.vmem [resolvable:$false] %s1164_s10 }
  0xb8   : > { %711 = vst [vmem:[%s1658_s20 + $0x70] sm:$0xff] %v695_v39  ;;  %v722_v24 = vmul.f32 %v714_v22, %v1582_v29  ;;  %v726_v15 = vmul.f32 %v1582_v29, %v306_v43  ;;  %v758_v52 = vmul.f32 %v714_v22, %v1586_v31  ;;  %v739_v59 = vsel %vm475_vm0, %v737_v49, %v738_v28  ;;  %s1166_s28 = scalar_lea.vmem %s1165_s10, 5120  ;;  %p1167_p1 = scmp.lt.s32.totalorder %s1908_s21, %s1165_s10 }
  0xb9   : > { %v696_v4 = vadd.f32 %v664_v60, %v543_v45  ;;  %v775_v27 = vsel %vm628_vm1, %v773_v57, %v774_v23  ;;  %v762_v63 = vmul.f32 %v1586_v31, %v306_v43  ;;  %v753_v3 = vadd.f32 %v739_v59, %v717_v46  ;;  %p1168_p0 = scmp.lt.s32.totalorder %s1166_s28, %s1160_s6 }
  0xba   : > { %v740_v44 = vrot.slane %v722_v24, 1  ;;  %v741_v25 = vrot.slane %v726_v15, 1  ;;  %v776_v36 = vrot.slane %v758_v52, 2  ;;  %v307_v54 = vsel %vm304_vm2, %v296_v30, 0.0 }
  0xbb   : > { %712 = vst [vmem:[%s1658_s20 + $0x78] sm:$0xff] %v696_v4  ;;  %v777_v29 = vrot.slane %v762_v63, 2  ;;  %v719_v10 = vmul.f32 %v715_v50, %v1624_v55  ;;  %v723_v51 = vmul.f32 %v715_v50, %v1627_v56  ;;  %v789_v53 = vadd.f32 %v775_v27, %v753_v3  ;;  %p1169_p4 = por %p1168_p0, %p1167_p1 }
  0xbc   : > { %v742_v2 = vsel %vm475_vm0, %v740_v44, %v741_v25  ;;  %v727_v31 = vmul.f32 %v1627_v56, %v307_v54  ;;  %v759_v42 = vmul.f32 %v715_v50, %v1662_v5  ;;  %v763_v47 = vmul.f32 %v1662_v5, %v307_v54 }
  0xbd   : > { %v754_v12 = vadd.f32 %v742_v2, %v718_v0  ;;  %v778_v61 = vsel %vm628_vm1, %v776_v36, %v777_v29  ;;  %v743_v1 = vrot.slane %v723_v51, 1  ;;  %793 = vst [vmem:[%s1658_s20 + $0x80] sm:$0xff] %v789_v53  ;;  %v308_v58 = vsel %vm304_vm2, %v297_v11, 0.0  ;;  %p1170_p8 = pnand %p1169_p4, %p1163_p11 }
  0xbe   : > { %v744_v55 = vrot.slane %v727_v31, 1  ;;  %v779_v48 = vrot.slane %v759_v42, 2  ;;  %v780_v56 = vrot.slane %v763_v47, 2  ;;  %v724_v14 = vmul.f32 %v716_v38, %v1678_v34 }
  0xbf   : > { %v790_v62 = vadd.f32 %v778_v61, %v754_v12  ;;  %v728_v19 = vmul.f32 %v1678_v34, %v308_v58  ;;  %v720_v26 = vmul.f32 %v716_v38, %v1665_v20  ;;  %v760_v5 = vmul.f32 %v716_v38, %v1698_v40 }
  0xc0   : > { %v745_v8 = vsel %vm475_vm0, %v743_v1, %v744_v55  ;;  %v764_v13 = vmul.f32 %v1698_v40, %v308_v58  ;;  %v781_v32 = vsel %vm628_vm1, %v779_v48, %v780_v56  ;;  %v746_v46 = vrot.slane %v724_v14, 1 }
  0xc1   : > { %794 = vst [vmem:[%s1658_s20 + $0x88] sm:$0xff] %v790_v62  ;;  %v755_v21 = vadd.f32 %v745_v8, %v719_v10  ;;  %v747_v9 = vrot.slane %v728_v19, 1  ;;  %v782_v6 = vrot.slane %v760_v5, 2 }
  0xc2   : > { %v783_v34 = vrot.slane %v764_v13, 2 }
  0xc3   : > { %v791_v7 = vadd.f32 %v781_v32, %v755_v21  ;;  %v748_v20 = vsel %vm475_vm0, %v746_v46, %v747_v9 }
  0xc4   : > { %v756_v16 = vadd.f32 %v748_v20, %v720_v26  ;;  %v784_v35 = vsel %vm628_vm1, %v782_v6, %v783_v34 }
  0xc5   : > { %795 = vst [vmem:[%s1658_s20 + $0x90] sm:$0xff] %v791_v7 }
  0xc6   : > { %v792_v40 = vadd.f32 %v784_v35, %v756_v16 }
  0xc8   : > { %796 = vst [vmem:[%s1658_s20 + $0x98] sm:$0xff] %v792_v40 }
  0xc9   : > { %1173 = shalt.err (!%p1170_p8)
}
  0xca   : > { %s1174_s23 = scalar_lea.hbm %s1913_s29, 2560  ;;  %s1178_s22 = scalar_lea.hbm %s1971_s3, 5120 }
  0xcb   : > { %p1175_p13 = scmp.ne.s32.totalorder %s1913_s29, %s1174_s23  ;;  %p1179_p12 = scmp.lt.u32.totalorder %s1913_s29, %s1971_s3 }
  0xcc   : > { %p1180_p6 = scmp.lt.u32.totalorder %s1178_s22, %s1174_s23  ;;  %p1182_p9 = scmp.lt.u32.totalorder %s1174_s23, %s1913_s29 }
  0xcd   : > { %p1176_p5 = pnand %p1175_p13, %p1998_p2 }
  0xce   : > { %p1181_p7 = por %p1180_p6, %p1179_p12 }
  0xcf   : > { %p1177_p3 = pneg %p1176_p5 }
  0xd0   : > { %p1183_p10 = por %p1182_p9, %p1181_p7 }
  0xd2   : > { %p1184_p11 = pnand %p1183_p10, %p1177_p3 }
  0xd4   : > { %1187 = shalt.err (!%p1184_p11)
}
  0xd5   : > { %s1280_s20 = smov 512   ;;  %s1281_s25 = smov 32  }
  0xd6   : > { %974 = dma.vmem_to_hbm [thread:$0]  (%p1998_p2), %s1908_s21, 2560, %s1913_s29, %s798_s17, %s1280_s20, %s1280_s20, %s1281_s25  }
  0xd7 PF: > { %s829_s12 = sand.u32 1, %s1252_s14   ;;  %p1999_p1 = scmp.ne.s32.totalorder %s1983_s27, 0 }
  0xd8   : > { %p2000_p0 = scmp.ge.s32.totalorder %s1272_s19, 2  ;;  %s830_s5 = scalar_lea.sflag [#allocation4], %s829_s12 }
  0xda   : > { %p988_p4 = pnand %p2000_p0, %p1999_p1 }
  0xdc   : > { %1237 = dma.done.wait (!%p988_p4), %s830_s5, 2560  }
  0xdd   : > { %1239 = vsyncadd (!%p988_p4), %s830_s5, 4294964736  ;;  %s22_s19 = sadd.s32 1, %s1272_s19   ;;  %s2001_s12 = smov %s1248_s13 }
  0xde   : > { %p19_p8 = scmp.ge.s32.totalorder %s22_s19, 4   ;;  %s1949_s13 = smov 0  }
  0xdf   : > { %s2002_s14 = smov %s1256_s15  ;;  %s2003_s15 = smov %s1260_s16 }
  0xe0   : > { %s2004_s16 = smov %s1467_s11  ;;  %s2005_s17 = smov %s1268_s18 }
  0xe1   : > { %s2006_s18 = smov %s2008_s8  ;;  %21 = sbr.rel (!%p19_p8) target bundleno = 11 (0xb), region = 95 }
  0xe8   :  { %835 = vsyncpa [#allocation3], 1 }
  0xe9   :  { %837 = vsyncpa [#allocation3 + $0x1], 1 }
  0xea   :  { %838 = vsyncpa [#allocation6], 1 }
  0xeb   :  { %840 = vsyncpa [#allocation6 + $0x1], 1 }
  0xec   :  { %841 = vsyncpa [#allocation4], 1 }
  0xed   :  { %843 = vsyncpa [#allocation4 + $0x1], 1 }

</bundles_post_ra>
